<compile_context>
chip_gen: v7x
topology: tpu7x:2x2x1
jax: 0.10.0
libtpu: 0.0.40
codegen_flags: <defaults>
</compile_context>

<pallas_src>
import functools
from typing import NamedTuple

import jax
import jax.numpy as jnp
from jax.experimental import pallas as pl
from jax.experimental.pallas import tpu as pltpu


def _round_up(n, m):
    return ((n + m - 1) // m) * m


class SlabOffsets(NamedTuple):
    """Row offsets (all 8-aligned sections) into the packed parameter slab."""
    w1: int   # (state_dim, cols)   rows w1 .. w1+state_dim
    w2: int   # (cols, cols)        rows w2 .. w2+cols
    w3: int   # (cols, cols)        rows w3 .. w3+cols
    b: int    # biases: row b -> b1, row b+1 -> b2, row b+2 -> b3


# ---------------------------------------------------------------------------
# Kernel: whole 3-layer MLP on one batch tile; weights from one resident slab.
# ---------------------------------------------------------------------------
def dqn_mlp_kernel(x_ref, p_ref, o_ref, *, offs, state_dim, action_dim):
    """x_ref: (TM, state_dim); p_ref: (rows, C) packed params; o_ref: (TM, action_dim).

    C = lane-padded feature width (multiple of 128).  All slab padding is zero,
    so computing in the padded space is exact; the first `action_dim` lanes of
    the final dot are the true Q-values and are the only ones stored.
    """
    cols = p_ref.shape[1]
    prec = jax.lax.Precision.HIGHEST

    x = x_ref[...]                                            # (TM, state_dim)

    w1 = p_ref[offs.w1:offs.w1 + state_dim, :]                # (state_dim, C)
    w2 = p_ref[offs.w2:offs.w2 + cols, :]                     # (C, C) zero-padded
    w3 = p_ref[offs.w3:offs.w3 + cols, :]                     # (C, C) zero-padded
    b1 = p_ref[offs.b + 0:offs.b + 1, :]                      # (1, C)
    b2 = p_ref[offs.b + 1:offs.b + 2, :]
    b3 = p_ref[offs.b + 2:offs.b + 3, :]

    h1 = jnp.maximum(
        jnp.dot(x, w1, precision=prec, preferred_element_type=jnp.float32) + b1, 0.0)
    h2 = jnp.maximum(
        jnp.dot(h1, w2, precision=prec, preferred_element_type=jnp.float32) + b2, 0.0)
    q = jnp.dot(h2, w3, precision=prec, preferred_element_type=jnp.float32) + b3

    # Fused output slice: only the useful action_dim lanes hit HBM.
    # TODO(synk): if the consumer is greedy action selection, fuse the argmax
    # here and emit a (TM, 1) int32 result instead of Q-values.
    o_ref[...] = q[:, :action_dim].astype(o_ref.dtype)


# ---------------------------------------------------------------------------
# Host-side packing: ONE contiguous zero-padded slab, built once per update.
# ---------------------------------------------------------------------------
def pack_params(params, state_dim, hidden, action_dim):
    cols = max(_round_up(hidden, 128), _round_up(action_dim, 128))   # lane tile
    sd_rows = _round_up(state_dim, 8)

    off = 0
    o_w1 = off; off += sd_rows
    o_w2 = off; off += cols
    o_w3 = off; off += cols
    o_b = off;  off += 8          # all three biases share one 8-row section
    rows = off

    slab = jnp.zeros((rows, cols), jnp.float32)
    slab = slab.at[o_w1:o_w1 + state_dim, :hidden].set(params["w1"])
    slab = slab.at[o_w2:o_w2 + hidden, :hidden].set(params["w2"])
    slab = slab.at[o_w3:o_w3 + hidden, :action_dim].set(params["w3"])
    slab = slab.at[o_b + 0, :hidden].set(params["b1"].reshape(-1))
    slab = slab.at[o_b + 1, :hidden].set(params["b2"].reshape(-1))
    slab = slab.at[o_b + 2, :action_dim].set(params["b3"].reshape(-1))
    return slab, SlabOffsets(o_w1, o_w2, o_w3, o_b)


# ---------------------------------------------------------------------------
# Forward: jitted, no padding, ragged last tile, resident weights.
# ---------------------------------------------------------------------------
@functools.partial(jax.jit, static_argnames=("offs", "action_dim"))
def lunar_lander_dqn_forward(x, slab, offs, action_dim):
    batch, state_dim = x.shape
    rows, cols = slab.shape

    # Batch tile: tiny batches -> one step; bigger batches split into >=2
    # "parallel" steps (v7x megacore), capped at 2048 rows (v5e/v6e amortize
    # the ~0.35 us/step grid overhead with few fat steps).
    rb = _round_up(batch, 8)
    if rb <= 256:
        tm = rb
    else:
        tm = min(2048, _round_up(pl.cdiv(rb, 2), 8))
    grid = (pl.cdiv(batch, tm),)

    kernel = functools.partial(
        dqn_mlp_kernel, offs=offs, state_dim=state_dim, action_dim=action_dim)

    flops = 2 * batch * (state_dim * cols + cols * cols + cols * action_dim)
    bytes_accessed = 4 * (batch * state_dim + slab.size + batch * action_dim)

    return pl.pallas_call(
        kernel,
        out_shape=jax.ShapeDtypeStruct((batch, action_dim), jnp.float32),
        grid=grid,
        in_specs=[
            # Activation stream: one TM-row tile per grid step (auto-pipelined;
            # the last tile may be ragged -- Pallas clamps the edge DMAs).
            pl.BlockSpec((tm, state_dim), lambda i: (i, 0)),
            # Packed parameter slab: constant block index -> VMEM-resident.
            pl.BlockSpec((rows, cols), lambda i: (0, 0)),
        ],
        out_specs=pl.BlockSpec((tm, action_dim), lambda i: (i, 0)),
        compiler_params=pltpu.CompilerParams(dimension_semantics=("parallel",)),
        cost_estimate=pl.CostEstimate(
            flops=int(flops), transcendentals=0, bytes_accessed=int(bytes_accessed)),
    )(x, slab)


# ---------------------------------------------------------------------------
# Deterministic init mimicking torch.nn.Linear (U(-1/sqrt(fan_in), +...)).
# Weights stored as (in, out) so the kernel computes x @ W + b.
# ---------------------------------------------------------------------------
def init_params(key, state_dim, action_dim, hidden):
    def linear(k, fan_in, fan_out):
        kw, kb = jax.random.split(k)
        bound = 1.0 / jnp.sqrt(jnp.float32(fan_in))
        w = jax.random.uniform(kw, (fan_in, fan_out), jnp.float32, -bound, bound)
        b = jax.random.uniform(kb, (1, fan_out), jnp.float32, -bound, bound)
        return w, b

    k1, k2, k3 = jax.random.split(key, 3)
    w1, b1 = linear(k1, state_dim, hidden)
    w2, b2 = linear(k2, hidden, hidden)
    w3, b3 = linear(k3, hidden, action_dim)
    return {"w1": w1, "b1": b1, "w2": w2, "b2": b2, "w3": w3, "b3": b3}


def reference_forward(x, p):
    prec = jax.lax.Precision.HIGHEST
    h1 = jnp.maximum(jnp.dot(x, p["w1"], precision=prec) + p["b1"], 0.0)
    h2 = jnp.maximum(jnp.dot(h1, p["w2"], precision=prec) + p["b2"], 0.0)
    return jnp.dot(h2, p["w3"], precision=prec) + p["b3"]


if __name__ == "__main__":
    # LunarLander-v2: state_space_dim=8, action_space_dim=4, hidden=12 (module default)
    state_dim, action_dim, hidden, batch = 8, 4, 12, 2

    key = jax.random.PRNGKey(0)
    kx, kp = jax.random.split(key)
    params = init_params(kp, state_dim, action_dim, hidden)

    # Pack once (per parameter update); reused across every forward call.
    slab, offs = pack_params(params, state_dim, hidden, action_dim)

    # Small inference-style batch -> single grid step.
    x = jax.random.normal(kx, (batch, state_dim), jnp.float32)
    out = jax.block_until_ready(lunar_lander_dqn_forward(x, slab, offs, action_dim))
    ref = reference_forward(x, params)
    assert out.shape == (batch, action_dim)
    assert jnp.allclose(out, ref, atol=1e-4, rtol=1e-4), "mismatch vs JAX reference (small batch)"

    # Training-style, non-multiple batch -> 2-step parallel grid, ragged last tile.
    xb = jax.random.normal(kx, (1027, state_dim), jnp.float32)
    outb = jax.block_until_ready(lunar_lander_dqn_forward(xb, slab, offs, action_dim))
    refb = reference_forward(xb, params)
    assert outb.shape == (1027, action_dim)
    assert jnp.allclose(outb, refb, atol=1e-3, rtol=1e-3), "mismatch vs JAX reference (batched)"

    print("KERNEL_OK")
</pallas_src>

<mosaic_0001>
module attributes {stable_mosaic.version = 11 : i64} {
  func.func @dqn_mlp_kernel(%arg0: i32, %arg1: memref<8x8xf32, #tpu.memory_space<vmem>>, %arg2: memref<272x128xf32, #tpu.memory_space<vmem>>, %arg3: memref<8x4xf32, #tpu.memory_space<vmem>>) attributes {dimension_semantics = [#tpu.dimension_semantics<parallel>], iteration_bounds = array<i64: 1>, scalar_prefetch = 0 : i64, scratch_operands = 0 : i64, tpu.core_type = #tpu.core_type<tc>, window_params = [{transform_indices = @transform_0, window_bounds = array<i64: 8, 8>}, {pipeline_mode = #tpu.pipeline_mode<synchronous>, transform_indices = @transform_1, window_bounds = array<i64: 272, 128>}, {transform_indices = @transform_2, window_bounds = array<i64: 8, 4>}]} {
    %c0 = arith.constant 0 : index
    %c0_0 = arith.constant 0 : index
    %0 = vector.load %arg1[%c0, %c0_0] : memref<8x8xf32, #tpu.memory_space<vmem>>, vector<8x8xf32>
    %c0_1 = arith.constant 0 : index
    %c0_2 = arith.constant 0 : index
    %1 = vector.load %arg2[%c0_1, %c0_2] : memref<272x128xf32, #tpu.memory_space<vmem>>, vector<8x128xf32>
    %c8 = arith.constant 8 : index
    %c0_3 = arith.constant 0 : index
    %2 = vector.load %arg2[%c8, %c0_3] : memref<272x128xf32, #tpu.memory_space<vmem>>, vector<128x128xf32>
    %c136 = arith.constant 136 : index
    %c0_4 = arith.constant 0 : index
    %3 = vector.load %arg2[%c136, %c0_4] : memref<272x128xf32, #tpu.memory_space<vmem>>, vector<128x128xf32>
    %c264 = arith.constant 264 : index
    %c0_5 = arith.constant 0 : index
    %4 = vector.load %arg2[%c264, %c0_5] : memref<272x128xf32, #tpu.memory_space<vmem>>, vector<1x128xf32>
    %c265 = arith.constant 265 : index
    %c0_6 = arith.constant 0 : index
    %5 = vector.load %arg2[%c265, %c0_6] : memref<272x128xf32, #tpu.memory_space<vmem>>, vector<1x128xf32>
    %c266 = arith.constant 266 : index
    %c0_7 = arith.constant 0 : index
    %6 = vector.load %arg2[%c266, %c0_7] : memref<272x128xf32, #tpu.memory_space<vmem>>, vector<1x128xf32>
    %cst = arith.constant dense<0.000000e+00> : vector<8x128xf32>
    %7 = tpu.matmul %0, %1, %cst {dimension_numbers = #tpu.dot_dimension_numbers<[1], [0], [0], [1], [0, 0, 1, 1], [], []>, precision = #tpu.contract_precision<fp32>} : vector<8x8xf32>, vector<8x128xf32>, vector<8x128xf32> -> vector<8x128xf32>
    %8 = vector.broadcast %4 : vector<1x128xf32> to vector<8x128xf32>
    %9 = arith.addf %7, %8 : vector<8x128xf32>
    %cst_8 = arith.constant 0.000000e+00 : f32
    %10 = vector.broadcast %cst_8 : f32 to vector<8x128xf32>
    %11 = arith.maximumf %9, %10 : vector<8x128xf32>
    %cst_9 = arith.constant dense<0.000000e+00> : vector<8x128xf32>
    %12 = tpu.matmul %11, %2, %cst_9 {dimension_numbers = #tpu.dot_dimension_numbers<[1], [0], [0], [1], [0, 0, 1, 1], [], []>, precision = #tpu.contract_precision<fp32>} : vector<8x128xf32>, vector<128x128xf32>, vector<8x128xf32> -> vector<8x128xf32>
    %13 = vector.broadcast %5 : vector<1x128xf32> to vector<8x128xf32>
    %14 = arith.addf %12, %13 : vector<8x128xf32>
    %cst_10 = arith.constant 0.000000e+00 : f32
    %15 = vector.broadcast %cst_10 : f32 to vector<8x128xf32>
    %16 = arith.maximumf %14, %15 : vector<8x128xf32>
    %cst_11 = arith.constant dense<0.000000e+00> : vector<8x128xf32>
    %17 = tpu.matmul %16, %3, %cst_11 {dimension_numbers = #tpu.dot_dimension_numbers<[1], [0], [0], [1], [0, 0, 1, 1], [], []>, precision = #tpu.contract_precision<fp32>} : vector<8x128xf32>, vector<128x128xf32>, vector<8x128xf32> -> vector<8x128xf32>
    %18 = vector.broadcast %6 : vector<1x128xf32> to vector<8x128xf32>
    %19 = arith.addf %17, %18 : vector<8x128xf32>
    %20 = vector.extract_strided_slice %19 {offsets = [0, 0], sizes = [8, 4], strides = [1, 1]} : vector<8x128xf32> to vector<8x4xf32>
    %c0_12 = arith.constant 0 : index
    %c0_13 = arith.constant 0 : index
    %21 = vector.load %arg3[%c0_12, %c0_13] : memref<8x4xf32, #tpu.memory_space<vmem>>, vector<8x4xf32>
    tpu.vector_store %arg3[%c0_12, %c0_13], %20 {strides = array<i32>} : memref<8x4xf32, #tpu.memory_space<vmem>>, vector<8x4xf32>,
    return
  }
  func.func @transform_0(%arg0: i32) -> (i32, i32) {
    %c0_i32 = arith.constant 0 : i32
    %c0_i32_0 = arith.constant 0 : i32
    return %arg0, %c0_i32 : i32, i32
  }
  func.func @transform_1(%arg0: i32) -> (i32, i32) {
    %c0_i32 = arith.constant 0 : i32
    %c0_i32_0 = arith.constant 0 : i32
    %c0_i32_1 = arith.constant 0 : i32
    return %c0_i32, %c0_i32_0 : i32, i32
  }
  func.func @transform_2(%arg0: i32) -> (i32, i32) {
    %c0_i32 = arith.constant 0 : i32
    %c0_i32_0 = arith.constant 0 : i32
    return %arg0, %c0_i32 : i32, i32
  }
}

</mosaic_0001>

<bundles_post_ra>
// kernel: lunar_lander_dqn_forward.1
= control target key start
LH: loop header
LB: loop body
LE: loop exit
PB: predicated region body
PF: predicated region fallthrough
CT: control target
= control target key end

     0   :  { %7 = vsyncpa [#allocation3], 0  ;;  %s3538_s0 = inlined_call_operand.hbm [shape: f32[2,8], index: 0, kind: input, shape index: {}]   ;;  %s3539_s1 = inlined_call_operand.hbm [shape: f32[272,128], index: 1, kind: input, shape index: {}]   ;;  %s3540_s2 = inlined_call_operand.hbm [shape: f32[2,4], index: 2, kind: output, shape index: {}]  }
   0x1   :  { %8 = vsyncpa [#allocation6], 0 }
   0x2   :  { %9 = vsyncpa [#allocation4], 0 }
   0x3   :  { %14 = vsyncadd [#allocation3], 96  ;;  %s2914_s9 = smov [#allocation2]   ;;  %s2842_s13 = scalar_lea.hbm %s3538_s0, 32 }
   0x4   :  { %s15_s10 = sshll.u32 %s2914_s9, 4  ;;  %p2843_p0 = scmp.ne.s32.totalorder %s3538_s0, %s2842_s13  ;;  %s16_s10 = int_to_ptr.vmem [resolvable:$true] %s15_s10 }
   0x5   :  { %p2846_p1 = scmp.lt.u32.totalorder %s2842_s13, %s3538_s0 }
   0x7   :  { %p2848_p2 = pnand %p2846_p1, %p2843_p0 }
   0x9   :  { %2851 = shalt.err (!%p2848_p2)
}
   0xa   :  { %s2852_s18 = scalar_lea.vmem %s16_s10, 32  ;;  %s2856_s19 = scalar_lea.vmem %s16_s10, 128 }
   0xb   :  { %p2853_p3 = scmp.ne.s32.totalorder %s16_s10, %s2852_s18  ;;  %p2857_p4 = scmp.lt.s32.totalorder %s16_s10, %s16_s10 }
   0xc   :  { %p2858_p5 = scmp.lt.s32.totalorder %s2856_s19, %s2852_s18 }
   0xe   :  { %p2859_p6 = por %p2858_p5, %p2857_p4 }
  0x10   :  { %p2860_p7 = pnand %p2859_p6, %p2853_p3 }
  0x12   :  { %2863 = shalt.err (!%p2860_p7)
}
  0x13   :  { %s2915_s20 = smov 32   ;;  %s2916_s21 = smov 2  }
  0x14   :  { %21 = dma.hbm_to_vmem [thread:$0]  %s3538_s0, 32, %s16_s10, [#allocation3], %s2915_s20, %s2915_s20, %s2916_s21  }
  0x15   :  { %s2917_s24 = smov [#allocation5]   ;;  %s2864_s28 = scalar_lea.hbm %s3539_s1, 4352 }
  0x16   :  { %s27_s25 = sshll.u32 %s2917_s24, 4  ;;  %p2865_p8 = scmp.ne.s32.totalorder %s3539_s1, %s2864_s28  ;;  %s28_s25 = int_to_ptr.vmem [resolvable:$true] %s27_s25 }
  0x17   :  { %p2868_p9 = scmp.lt.u32.totalorder %s2864_s28, %s3539_s1 }
  0x19   :  { %p2870_p10 = pnand %p2868_p9, %p2865_p8 }
  0x1b   :  { %2873 = shalt.err (!%p2870_p10)
}
  0x1c   :  { %s2874_s5 = scalar_lea.vmem %s28_s25, 4352  ;;  %p2879_p12 = scmp.lt.s32.totalorder %s28_s25, %s28_s25 }
  0x1d   :  { %p2875_p11 = scmp.ne.s32.totalorder %s28_s25, %s2874_s5  ;;  %p2880_p13 = scmp.lt.s32.totalorder %s2874_s5, %s2874_s5 }
  0x1f   :  { %p2881_p0 = por %p2880_p13, %p2879_p12 }
  0x21   :  { %p2882_p1 = pnand %p2881_p0, %p2875_p11 }
  0x23   :  { %2885 = shalt.err (!%p2882_p1)
}
  0x24   :  { %s2918_s0 = smov 128   ;;  %s2919_s6 = smov 8  }
  0x25   :  { %33 = dma.hbm_to_vmem [thread:$0]  %s3539_s1, 4352, %s28_s25, [#allocation6], %s2918_s0, %s2918_s0, %s2919_s6  }
  0x26   :  { %2908 = dma.done.wait [#allocation3], 128  }
  0x27   :  { %2909 = vsyncadd [#allocation3], 4294967168 }
  0x28   :  { %2910 = dma.done.wait [#allocation6], 4352  }
  0x29   :  { %2911 = vsyncadd [#allocation6], 4294962944  ;;  %v2920_v0 = vmov 0.0   ;;  %vm2921_vm0 = vmmov 0   ;;  %vm81_vm1 = vcmask 64512   ;;  %v41_v1 = vld [vmem:[#allocation5] sm:$0xff] }
  0x2a   :  { %2077 = vmatprep.subr.mxu0 %v2920_v0  ;;  %2079 = vmatprep.mubr.msk.f32.mxu0 %vm2921_vm0, %v2920_v0  ;;  %v40_v2 = vld [vmem:[#allocation2] sm:$0xff]  ;;  %v42_v3 = vld [vmem:[#allocation5 + $0x8] sm:$0xff]  ;;  %v86_v4 = vand.u32 4294901760, %v41_v1  ;;  %v43_v6 = vld [vmem:[#allocation5 + $0x10] sm:$0xff]  ;;  %v2922_v32 = vmov 0.0|0.0   ;;  %vm1823_vm2 = vcmask 31744  }
  0x2b   :  { %2062 = vmatprep.subr.mxu1 %v2920_v0  ;;  %2064 = vmatprep.mubr.msk.f32.mxu1 %vm2921_vm0, %v2920_v0  ;;  %v83_v5 = vsel %vm81_vm1, %v40_v2, 0  ;;  %v537_v7 = vand.u32 4294901760, %v42_v3  ;;  %v44_v8 = vld [vmem:[#allocation5 + $0x18] sm:$0xff]  ;;  %v45_v9 = vld [vmem:[#allocation5 + $0x20] sm:$0xff]  ;;  %v540_v11 = vand.u32 4294901760, %v43_v6  ;;  %v46_v12 = vld [vmem:[#allocation5 + $0x28] sm:$0xff] }
  0x2c   :  { %v151_v10 = vand.u32 4294901760, %v83_v5  ;;  %v47_v13 = vld [vmem:[#allocation5 + $0x30] sm:$0xff]  ;;  %v163_v14 = vsub.f32 %v41_v1, %v86_v4  ;;  %2078 = vmatpush3.msra.mxu0 %v86_v4  ;;  %2063 = vmatpush3.msra.mxu1 %v86_v4  ;;  %v543_v16 = vand.u32 4294901760, %v44_v8  ;;  %v546_v17 = vand.u32 4294901760, %v45_v9  ;;  %v48_v36 = vld [vmem:[#allocation5 + $0x38] sm:$0xff]  ;;  %v49_v37 = vld [vmem:[#allocation5 + $0x40] sm:$0xff] }
  0x2d   :  { %v2972_v15 = vsub.f32 %v42_v3, %v537_v7  ;;  %2067 = vmatprep.subr.mxu1 %v2920_v0  ;;  %2082 = vmatprep.subr.mxu0 %v2920_v0  ;;  %v2976_v19 = vsub.f32 %v43_v6, %v540_v11  ;;  %v549_v20 = vand.u32 4294901760, %v46_v12  ;;  %v552_v21 = vand.u32 4294901760, %v47_v13  ;;  %v50_v41 = vld [vmem:[#allocation5 + $0x48] sm:$0xff]  ;;  %v51_v42 = vld [vmem:[#allocation5 + $0x50] sm:$0xff]  ;;  %v52_v48 = vld [vmem:[#allocation5 + $0x58] sm:$0xff] }
  0x2e   :  { %v152_v18 = vsub.f32 %v83_v5, %v151_v10  ;;  %v164_v22 = vand.u32 4294901760, %v163_v14  ;;  %v2978_v23 = vsub.f32 %v44_v8, %v543_v16  ;;  %v2980_v24 = vsub.f32 %v45_v9, %v546_v17  ;;  %v53_v49 = vld [vmem:[#allocation5 + $0x60] sm:$0xff]  ;;  %v54_v53 = vld [vmem:[#allocation5 + $0x68] sm:$0xff]  ;;  %v55_v54 = vld [vmem:[#allocation5 + $0x70] sm:$0xff] }
  0x2f   :  { %v2982_v26 = vsub.f32 %v46_v12, %v549_v20  ;;  %v2984_v27 = vsub.f32 %v47_v13, %v552_v21  ;;  %v2998_v33 = vpack.c.bf16 %v540_v11, %v537_v7  ;;  %v3003_v34 = vpack.c.bf16 %v546_v17, %v543_v16  ;;  %v56_v58 = vld [vmem:[#allocation5 + $0x78] sm:$0xff]  ;;  %v57_v59 = vld [vmem:[#allocation5 + $0x80] sm:$0xff] }
  0x30   :  { %v153_v25 = vand.u32 4294901760, %v152_v18  ;;  %v165_v28 = vsub.f32 %v163_v14, %v164_v22  ;;  %v3009_v35 = vpack.c.bf16 %v552_v21, %v549_v20  ;;  %v555_v38 = vand.u32 4294901760, %v48_v36 }
  0x31   :  { %v558_v39 = vand.u32 4294901760, %v49_v37  ;;  %v561_v45 = vand.u32 4294901760, %v50_v41  ;;  %v564_v46 = vand.u32 4294901760, %v51_v42  ;;  %v567_v50 = vand.u32 4294901760, %v52_v48 }
  0x32   :  { %2080 = vmatmul.mubr.f32.vlgmr.msra.gmra.mrb[0].mxu0 %v153_v25  ;;  %v154_v29 = vsub.f32 %v152_v18, %v153_v25  ;;  %v166_v30 = vand.u32 4294901760, %v165_v28  ;;  %v3017_v43 = vsub.f32 %v48_v36, %v555_v38  ;;  %v570_v51 = vand.u32 4294901760, %v53_v49 }
  0x33   :  { %2083 = vmatpush3.msra.mxu0 %v164_v22  ;;  %2084 = vmatprep.mubr.msk.f32.mxu0 %vm2921_vm0, %v2920_v0  ;;  %v3014_v40 = vpack.c.bf16 %v558_v39, %v555_v38  ;;  %v3019_v44 = vsub.f32 %v49_v37, %v558_v39  ;;  %v3022_v47 = vpack.c.bf16 %v564_v46, %v561_v45  ;;  %v573_v55 = vand.u32 4294901760, %v54_v53 }
  0x34   :  { %v155_v31 = vand.u32 4294901760, %v154_v29  ;;  %2087 = vmatprep.subr.mxu0 %v2920_v0  ;;  %v3026_v52 = vpack.c.bf16 %v570_v51, %v567_v50  ;;  %v576_v56 = vand.u32 4294901760, %v55_v54  ;;  %v579_v60 = vand.u32 4294901760, %v56_v58 }
  0x35   :  { %v582_v61 = vand.u32 4294901760, %v57_v59  ;;  %v630_v62 = vand.u32 4294901760, %v2972_v15  ;;  %v637_v63 = vand.u32 4294901760, %v2976_v19  ;;  %v3036_v1 = vsub.f32 %v50_v41, %v561_v45 }
  0x36   :  { %2065 = vmatmul.mubr.f32.vlgmr.msra.gmra.mrb[0].mxu1 %v155_v31  ;;  %v3030_v57 = vpack.c.bf16 %v576_v56, %v573_v55  ;;  %v3038_v2 = vsub.f32 %v51_v42, %v564_v46  ;;  %v3040_v3 = vsub.f32 %v52_v48, %v567_v50  ;;  %v3044_v5 = vsub.f32 %v54_v53, %v573_v55 }
  0x37   :  { %2068 = vmatpush3.msra.mxu1 %v166_v30  ;;  %2069 = vmatprep.mubr.msk.f32.mxu1 %vm2921_vm0, %v2920_v0  ;;  %v3046_v6 = vsub.f32 %v55_v54, %v576_v56  ;;  %v3048_v7 = vpack.c.bf16 %v582_v61, %v579_v60  ;;  %v3050_v8 = vsub.f32 %v56_v58, %v579_v60  ;;  %v644_v12 = vand.u32 4294901760, %v2978_v23 }
  0x38   :  { %2072 = vmatprep.subr.mxu1 %v2920_v0  ;;  %v3052_v9 = vsub.f32 %v57_v59, %v582_v61  ;;  %v638_v11 = vsub.f32 %v2976_v19, %v637_v63  ;;  %v651_v13 = vand.u32 4294901760, %v2980_v24  ;;  %v3552_v25 = vand.u32 4294901760, %v2982_v26 }
  0x39   :  { %v645_v17 = vsub.f32 %v2978_v23, %v644_v12  ;;  %v3551_v28 = vand.u32 4294901760, %v2984_v27  ;;  %v3550_v38 = vand.u32 4294901760, %v3017_v43  ;;  %v3549_v39 = vand.u32 4294901760, %v3019_v44 }
  0x3a   :  { %2085 = vmatmul.mubr.f32.vlgmr.msra.gmra.mrb[0].mxu0 %v151_v10  ;;  %v639_v16 = vand.u32 4294901760, %v638_v11  ;;  %v659_v30 = vsub.f32 %v2982_v26, %v3552_v25  ;;  %v3547_v50 = vand.u32 4294901760, %v3038_v2  ;;  %v3546_v58 = vand.u32 4294901760, %v3040_v3 }
  0x3b   :  { %2088 = vmatpush3.msra.mxu0 %v86_v4  ;;  %2089 = vmatprep.mubr.msk.f32.mxu0 %vm2921_vm0, %v2920_v0  ;;  %v3042_v4 = vsub.f32 %v53_v49, %v570_v51  ;;  %v646_v21 = vand.u32 4294901760, %v645_v17  ;;  %v666_v31 = vsub.f32 %v2984_v27, %v3551_v28  ;;  %v673_v42 = vsub.f32 %v3017_v43, %v3550_v38 }
  0x3c   :  { %2656 = vmatprep.subr.bf16.mxu0 %v2922_v32  ;;  %v660_v36 = vand.u32 4294901760, %v659_v30  ;;  %v680_v45 = vsub.f32 %v3019_v44, %v3549_v39  ;;  %v3548_v49 = vand.u32 4294901760, %v3036_v1  ;;  %v694_v54 = vsub.f32 %v3038_v2, %v3547_v50 }
  0x3d   :  { %v667_v37 = vand.u32 4294901760, %v666_v31  ;;  %v674_v46 = vand.u32 4294901760, %v673_v42  ;;  %v3545_v59 = vand.u32 4294901760, %v3042_v4  ;;  %v701_v61 = vsub.f32 %v3040_v3, %v3546_v58 }
  0x3e   :  { %2070 = vmatmul.mubr.f32.vlgmr.msra.gmra.mrb[0].mxu1 %v151_v10  ;;  %v681_v48 = vand.u32 4294901760, %v680_v45  ;;  %v687_v53 = vsub.f32 %v3036_v1, %v3548_v49  ;;  %v695_v56 = vand.u32 4294901760, %v694_v54  ;;  %v3543_v17 = vand.u32 4294901760, %v3046_v6  ;;  %v67_v49 = vld [vmem:[#allocation5 + $0xd0] sm:$0xff] }
  0x3f   :  { %2073 = vmatpush3.msra.mxu1 %v163_v14  ;;  %2074 = vmatprep.mubr.msk.f32.mxu1 %vm2921_vm0, %v2920_v0  ;;  %v2543_v41 = vpack.c.bf16 %v667_v37, %v660_v36  ;;  %v702_v11 = vand.u32 4294901760, %v701_v61  ;;  %v3542_v36 = vand.u32 4294901760, %v3050_v8  ;;  %v3541_v37 = vand.u32 4294901760, %v3052_v9 }
  0x40   :  { %2512 = vmatprep.subr.bf16.mxu1 %v2922_v32  ;;  %v2546_v51 = vpack.c.bf16 %v681_v48, %v674_v46  ;;  %v688_v55 = vand.u32 4294901760, %v687_v53  ;;  %v2567_v61 = vpack.c.bf16 %v2984_v27, %v2982_v26 }
  0x41   :  { %v729_v45 = vsub.f32 %v3050_v8, %v3542_v36  ;;  %v736_v46 = vsub.f32 %v3052_v9, %v3541_v37 }
  0x42   :  { %2090 = vmatmul.mubr.f32.vlgmr.msra.gmra.mrb[0].mxu0 %v151_v10  ;;  %v631_v10 = vsub.f32 %v2972_v15, %v630_v62  ;;  %v2549_v60 = vpack.c.bf16 %v695_v56, %v688_v55  ;;  %v2561_v55 = vpack.c.bf16 %v2976_v19, %v2972_v15  ;;  %v2564_v56 = vpack.c.bf16 %v2980_v24, %v2978_v23 }
  0x43   :  { %2334 = vmatprep.mubr.msk.f32.mxu0 %vm2921_vm0, %v2920_v0  ;;  %v730_v48 = vand.u32 4294901760, %v729_v45  ;;  %v737_v53 = vand.u32 4294901760, %v736_v46  ;;  %v1843_v45 = vld [vmem:[#allocation5 + $0x108] ss:$0 sm:$0xff]  ;;  %v3557_v15 = vand.u32 4294901760, %v2982_v26  ;;  %v3558_v19 = vand.u32 4294901760, %v2984_v27 }
  0x44   :  { %v632_v14 = vand.u32 4294901760, %v631_v10  ;;  %v708_v10 = vsub.f32 %v3042_v4, %v3545_v59  ;;  %v3560_v23 = vand.u32 4294901760, %v3019_v44  ;;  %v3563_v26 = vand.u32 4294901760, %v3040_v3 }
  0x45   :  { %v2558_v54 = vpack.c.bf16 %v737_v53, %v730_v48  ;;  %v3564_v27 = vand.u32 4294901760, %v3042_v4 }
  0x46   :  { %2075 = vmatmul.mubr.f32.vlgmr.msra.gmra.mrb[0].mxu1 %v152_v18  ;;  %v652_v18 = vsub.f32 %v2980_v24, %v651_v13  ;;  %v3070_v20 = vpack.c.bf16 %v639_v16, %v632_v14  ;;  %v709_v14 = vand.u32 4294901760, %v708_v10  ;;  %v3544_v16 = vand.u32 4294901760, %v3044_v5 }
  0x47   :  { %2514 = vmatpush3.bf16.msra.mxu1 %v2998_v33  ;;  %2124 = vmatprep.mubr.msk.f32.mxu1 %vm2921_vm0, %v2920_v0  ;;  %v2570_v10 = vpack.c.bf16 %v3019_v44, %v3017_v43  ;;  %v3566_v44 = vand.u32 4294901760, %v3046_v6 }
  0x48   :  { %2515 = vmatprep.subr.bf16.mxu1 %v2922_v32  ;;  %v653_v22 = vand.u32 4294901760, %v652_v18  ;;  %v2552_v18 = vpack.c.bf16 %v709_v14, %v702_v11  ;;  %v2573_v11 = vpack.c.bf16 %v3038_v2, %v3036_v1  ;;  %v2576_v14 = vpack.c.bf16 %v3042_v4, %v3040_v3  ;;  %v71_v4 = vld [vmem:[#allocation5 + $0xf0] sm:$0xff] }
  0x4a   :  { %v3074_v29 = vpack.c.bf16 %v653_v22, %v646_v21  ;;  %v715_v21 = vsub.f32 %v3044_v5, %v3544_v16  ;;  %v722_v22 = vsub.f32 %v3046_v6, %v3543_v17 }
  0x4b   :  { %2517 = vmatpush3.bf16.msra.mxu1 %v3003_v34 }
  0x4c   :  { %2518 = vmatprep.subr.bf16.mxu1 %v2922_v32  ;;  %v716_v30 = vand.u32 4294901760, %v715_v21  ;;  %v723_v31 = vand.u32 4294901760, %v722_v22  ;;  %v2579_v21 = vpack.c.bf16 %v3046_v6, %v3044_v5  ;;  %v2582_v22 = vpack.c.bf16 %v3052_v9, %v3050_v8  ;;  %v72_v6 = vld [vmem:[#allocation5 + $0xf8] sm:$0xff] }
  0x4e   :  { %v2555_v42 = vpack.c.bf16 %v723_v31, %v716_v30 }
  0x4f   :  { %2520 = vmatpush3.bf16.msra.mxu1 %v3009_v35 }
  0x50   :  { %2521 = vmatprep.subr.bf16.mxu1 %v2922_v32 }
  0x53   :  { %2523 = vmatpush3.bf16.msra.mxu1 %v3014_v40 }
  0x54   :  { %2524 = vmatprep.subr.bf16.mxu1 %v2922_v32 }
  0x57   :  { %2526 = vmatpush3.bf16.msra.mxu1 %v3022_v47 }
  0x58   :  { %2527 = vmatprep.subr.bf16.mxu1 %v2922_v32 }
  0x5b   :  { %2529 = vmatpush3.bf16.msra.mxu1 %v3026_v52 }
  0x5c   :  { %2530 = vmatprep.subr.bf16.mxu1 %v2922_v32 }
  0x5f   :  { %2532 = vmatpush3.bf16.msra.mxu1 %v3030_v57 }
  0x60   :  { %2533 = vmatprep.subr.bf16.mxu1 %v2922_v32 }
  0x63   :  { %2535 = vmatpush3.bf16.msra.mxu1 %v3048_v7 }
  0x64   :  { %2536 = vmatprep.subr.bf16.mxu1 %v2922_v32 }
 0x115   :  { %v527_v30 = vpop.f32.mrb[0].mxu0 }
 0x116   :  { %v2091_v31 = vpop.f32.mrb[1].mxu0 }
 0x117   :  { %v65_v31 = vld [vmem:[#allocation5 + $0xc0] sm:$0xff] }
 0x119   :  { %v307_v46 = vpop.f32.mrb[0].mxu1 }
 0x11a   :  { %v2800_v48 = vadd.f32 %v1843_v45, %v307_v46  ;;  %v2076_v53 = vpop.f32.mrb[1].mxu1  ;;  %v66_v45 = vld [vmem:[#allocation5 + $0xc8] sm:$0xff] }
 0x11c   :  { %v2801_v37 = vadd.f32 %v2800_v48, %v527_v30  ;;  %v64_v30 = vld [vmem:[#allocation5 + $0xb8] sm:$0xff] }
 0x11e   :  { %v531_v36 = vmax.f32 %v2801_v37, 0.0 }
 0x120   :  { %v3138_v17 = vand.u32 4294901760, %v531_v36 }
 0x122   :  { %v3141_v16 = vsub.f32 %v531_v36, %v3138_v17  ;;  %v63_v36 = vld [vmem:[#allocation5 + $0xb0] sm:$0xff] }
 0x124   :  { %v619_v59 = vand.u32 4294901760, %v3141_v16 }
 0x126   :  { %v620_v58 = vsub.f32 %v3141_v16, %v619_v59 }
 0x128   :  { %v621_v50 = vand.u32 4294901760, %v620_v58  ;;  %v61_v58 = vld [vmem:[#allocation5 + $0xa0] sm:$0xff] }
 0x129   :  { %v1192_v37 = vand.u32 4294901760, %v61_v58 }
 0x12a   :  { %2125 = vmatmul.mubr.f32.vlgmr.msra.gmra.mrb[2].mxu1 %v621_v50 }
 0x12b   :  { %2538 = vmatpush3.bf16.msra.mxu1 %v3070_v20  ;;  %2159 = vmatprep.mubr.msk.f32.mxu1 %vm2921_vm0, %v2920_v0  ;;  %v58_v20 = vld [vmem:[#allocation5 + $0x88] sm:$0xff]  ;;  %v3173_v38 = vsub.f32 %v61_v58, %v1192_v37 }
 0x12c   :  { %2539 = vmatprep.subr.bf16.mxu1 %v2922_v32  ;;  %v1183_v50 = vand.u32 4294901760, %v58_v20 }
 0x12f   :  { %2541 = vmatpush3.bf16.msra.mxu1 %v3074_v29  ;;  %v59_v29 = vld [vmem:[#allocation5 + $0x90] sm:$0xff] }
 0x130   :  { %2542 = vmatprep.subr.bf16.mxu1 %v2922_v32 }
 0x133   :  { %2544 = vmatpush3.bf16.msra.mxu1 %v2543_v41  ;;  %v60_v41 = vld [vmem:[#allocation5 + $0x98] sm:$0xff] }
 0x134   :  { %2545 = vmatprep.subr.bf16.mxu1 %v2922_v32 }
 0x137   :  { %2547 = vmatpush3.bf16.msra.mxu1 %v2546_v51  ;;  %v1186_v51 = vand.u32 4294901760, %v59_v29 }
 0x138   :  { %2548 = vmatprep.subr.bf16.mxu1 %v2922_v32 }
 0x139   :  { %v3163_v46 = vpack.c.bf16 %v1186_v51, %v1183_v50  ;;  %v3167_v48 = vsub.f32 %v59_v29, %v1186_v51  ;;  %v1204_v29 = vand.u32 4294901760, %v65_v31 }
 0x13b   :  { %2550 = vmatpush3.bf16.msra.mxu1 %v2549_v60  ;;  %v1189_v60 = vand.u32 4294901760, %v60_v41  ;;  %2658 = vmatpush3.bf16.msra.mxu0 %v3163_v46  ;;  %v3187_v58 = vsub.f32 %v65_v31, %v1204_v29 }
 0x13c   :  { %2551 = vmatprep.subr.bf16.mxu1 %v2922_v32  ;;  %2659 = vmatprep.subr.bf16.mxu0 %v2922_v32 }
 0x13d   :  { %v3169_v53 = vsub.f32 %v60_v41, %v1189_v60  ;;  %v3171_v39 = vpack.c.bf16 %v1192_v37, %v1189_v60  ;;  %v1210_v41 = vand.u32 4294901760, %v67_v49 }
 0x13f   :  { %2553 = vmatpush3.bf16.msra.mxu1 %v2552_v18  ;;  %v62_v18 = vld [vmem:[#allocation5 + $0xa8] sm:$0xff]  ;;  %2661 = vmatpush3.bf16.msra.mxu0 %v3171_v39 }
 0x140   :  { %2554 = vmatprep.subr.bf16.mxu1 %v2922_v32  ;;  %2662 = vmatprep.subr.bf16.mxu0 %v2922_v32 }
 0x143   :  { %2556 = vmatpush3.bf16.msra.mxu1 %v2555_v42  ;;  %v1195_v42 = vand.u32 4294901760, %v62_v18 }
 0x144   :  { %2557 = vmatprep.subr.bf16.mxu1 %v2922_v32 }
 0x145   :  { %v3175_v28 = vsub.f32 %v62_v18, %v1195_v42  ;;  %v3191_v18 = vsub.f32 %v67_v49, %v1210_v41 }
 0x147   :  { %2559 = vmatpush3.bf16.msra.mxu1 %v2558_v54  ;;  %v1198_v54 = vand.u32 4294901760, %v63_v36 }
 0x148   :  { %2560 = vmatprep.subr.bf16.mxu1 %v2922_v32 }
 0x149   :  { %v3181_v25 = vsub.f32 %v63_v36, %v1198_v54 }
 0x14a   :  { %2160 = vmatmul.mubr.f32.vlgmr.msra.gmra.mrb[2].mxu1 %v3138_v17 }
 0x14b   :  { %2562 = vmatpush3.bf16.msra.mxu1 %v2561_v55  ;;  %2194 = vmatprep.mubr.msk.f32.mxu1 %vm2921_vm0, %v2920_v0  ;;  %v3165_v55 = vsub.f32 %v58_v20, %v1183_v50  ;;  %v1201_v20 = vand.u32 4294901760, %v64_v30  ;;  %v1207_v50 = vand.u32 4294901760, %v66_v45 }
 0x14c   :  { %2563 = vmatprep.subr.bf16.mxu1 %v2922_v32 }
 0x14d   :  { %v3185_v51 = vsub.f32 %v64_v30, %v1201_v20  ;;  %v3189_v60 = vsub.f32 %v66_v45, %v1207_v50  ;;  %v3205_v49 = vpack.c.bf16 %v1204_v29, %v1201_v20 }
 0x14f   :  { %2565 = vmatpush3.bf16.msra.mxu1 %v2564_v56  ;;  %v3197_v56 = vpack.c.bf16 %v1198_v54, %v1195_v42 }
 0x150   :  { %2566 = vmatprep.subr.bf16.mxu1 %v2922_v32 }
 0x151   :  { %2664 = vmatpush3.bf16.msra.mxu0 %v3197_v56 }
 0x152   :  { %2665 = vmatprep.subr.bf16.mxu0 %v2922_v32 }
 0x153   :  { %2568 = vmatpush3.bf16.msra.mxu1 %v2567_v61  ;;  %v3213_v61 = vpack.c.bf16 %v1210_v41, %v1207_v50 }
 0x154   :  { %2569 = vmatprep.subr.bf16.mxu1 %v2922_v32 }
 0x155   :  { %2667 = vmatpush3.bf16.msra.mxu0 %v3205_v49 }
 0x156   :  { %2668 = vmatprep.subr.bf16.mxu0 %v2922_v32 }
 0x157   :  { %2571 = vmatpush3.bf16.msra.mxu1 %v2570_v10  ;;  %v2609_v10 = vpack.c.bf16 %v637_v63, %v630_v62  ;;  %v2615_v62 = vpack.c.bf16 %v3558_v19, %v3557_v15  ;;  %v3559_v63 = vand.u32 4294901760, %v3017_v43  ;;  %v3565_v43 = vand.u32 4294901760, %v3044_v5 }
 0x158   :  { %2572 = vmatprep.subr.bf16.mxu1 %v2922_v32  ;;  %v1222_v5 = vand.u32 4294901760, %v71_v4 }
 0x159   :  { %2670 = vmatpush3.bf16.msra.mxu0 %v3213_v61  ;;  %v2618_v24 = vpack.c.bf16 %v3560_v23, %v3559_v63  ;;  %v1304_v63 = vand.u32 4294901760, %v3175_v28  ;;  %v1311_v23 = vand.u32 4294901760, %v3181_v25 }
 0x15a   :  { %2671 = vmatprep.subr.bf16.mxu0 %v2922_v32  ;;  %v3337_v45 = vsub.f32 %v71_v4, %v1222_v5 }
 0x15b   :  { %2574 = vmatpush3.bf16.msra.mxu1 %v2573_v11  ;;  %v2612_v11 = vpack.c.bf16 %v651_v13, %v644_v12  ;;  %v3561_v12 = vand.u32 4294901760, %v3036_v1  ;;  %v3562_v13 = vand.u32 4294901760, %v3038_v2  ;;  %v3567_v1 = vand.u32 4294901760, %v3050_v8 }
 0x15c   :  { %2575 = vmatprep.subr.bf16.mxu1 %v2922_v32  ;;  %v3568_v2 = vand.u32 4294901760, %v3052_v9  ;;  %v1225_v8 = vand.u32 4294901760, %v72_v6 }
 0x15e   :  { %v3340_v20 = vsub.f32 %v72_v6, %v1225_v8 }
 0x15f   :  { %2577 = vmatpush3.bf16.msra.mxu1 %v2576_v14  ;;  %v2627_v14 = vpack.c.bf16 %v3566_v44, %v3565_v43  ;;  %v1318_v43 = vand.u32 4294901760, %v3185_v51  ;;  %v1325_v44 = vand.u32 4294901760, %v3187_v58 }
 0x160   :  { %2578 = vmatprep.subr.bf16.mxu1 %v2922_v32 }
 0x163   :  { %2580 = vmatpush3.bf16.msra.mxu1 %v2579_v21  ;;  %v2630_v21 = vpack.c.bf16 %v3568_v2, %v3567_v1  ;;  %v1319_v1 = vsub.f32 %v3185_v51, %v1318_v43  ;;  %v1326_v2 = vsub.f32 %v3187_v58, %v1325_v44 }
 0x164   :  { %2581 = vmatprep.subr.bf16.mxu1 %v2922_v32 }
 0x167   :  { %2583 = vmatpush3.bf16.msra.mxu1 %v2582_v22  ;;  %v1283_v22 = vand.u32 4294901760, %v3167_v48 }
 0x168   :  { %2584 = vmatprep.subr.bf16.mxu1 %v2922_v32 }
 0x169   :  { %v1284_v42 = vsub.f32 %v3167_v48, %v1283_v22 }
 0x16a   :  { %2195 = vmatmul.mubr.f32.vlgmr.msra.gmra.mrb[2].mxu1 %v3141_v16  ;;  %v2624_v16 = vpack.c.bf16 %v3564_v27, %v3563_v26 }
 0x16b   :  { %2586 = vmatpush3.bf16.msra.mxu1 %v2998_v33  ;;  %2229 = vmatprep.mubr.msk.f32.mxu1 %vm2921_vm0, %v2920_v0  ;;  %v1285_v41 = vand.u32 4294901760, %v1284_v42 }
 0x16c   :  { %2587 = vmatprep.subr.bf16.mxu1 %v2922_v32 }
 0x16f   :  { %2589 = vmatpush3.bf16.msra.mxu1 %v3003_v34 }
 0x170   :  { %2590 = vmatprep.subr.bf16.mxu1 %v2922_v32 }
 0x173   :  { %2592 = vmatpush3.bf16.msra.mxu1 %v3009_v35 }
 0x174   :  { %2593 = vmatprep.subr.bf16.mxu1 %v2922_v32 }
 0x177   :  { %2595 = vmatpush3.bf16.msra.mxu1 %v3014_v40 }
 0x178   :  { %2596 = vmatprep.subr.bf16.mxu1 %v2922_v32 }
 0x17b   :  { %2598 = vmatpush3.bf16.msra.mxu1 %v3022_v47 }
 0x17c   :  { %2599 = vmatprep.subr.bf16.mxu1 %v2922_v32 }
 0x17f   :  { %2601 = vmatpush3.bf16.msra.mxu1 %v3026_v52 }
 0x180   :  { %2602 = vmatprep.subr.bf16.mxu1 %v2922_v32 }
 0x183   :  { %2604 = vmatpush3.bf16.msra.mxu1 %v3030_v57 }
 0x184   :  { %2605 = vmatprep.subr.bf16.mxu1 %v2922_v32 }
 0x187   :  { %2607 = vmatpush3.bf16.msra.mxu1 %v3048_v7 }
 0x188   :  { %2608 = vmatprep.subr.bf16.mxu1 %v2922_v32 }
 0x18a   :  { %2230 = vmatmul.mubr.f32.vlgmr.msra.gmra.mrb[2].mxu1 %v619_v59  ;;  %v2621_v59 = vpack.c.bf16 %v3562_v13, %v3561_v12  ;;  %v1305_v13 = vsub.f32 %v3175_v28, %v1304_v63 }
 0x18b   :  { %2610 = vmatpush3.bf16.msra.mxu1 %v2609_v10  ;;  %2264 = vmatprep.mubr.msk.f32.mxu1 %vm2921_vm0, %v2920_v0  ;;  %v1290_v10 = vand.u32 4294901760, %v3169_v53 }
 0x18c   :  { %2611 = vmatprep.subr.bf16.mxu1 %v2922_v32  ;;  %v1306_v27 = vand.u32 4294901760, %v1305_v13 }
 0x18d   :  { %v1291_v19 = vsub.f32 %v3169_v53, %v1290_v10 }
 0x18f   :  { %2613 = vmatpush3.bf16.msra.mxu1 %v2612_v11  ;;  %v1297_v11 = vand.u32 4294901760, %v3173_v38 }
 0x190   :  { %2614 = vmatprep.subr.bf16.mxu1 %v2922_v32 }
 0x193   :  { %2616 = vmatpush3.bf16.msra.mxu1 %v2615_v62  ;;  %v1298_v62 = vsub.f32 %v3173_v38, %v1297_v11 }
 0x194   :  { %2617 = vmatprep.subr.bf16.mxu1 %v2922_v32 }
 0x195   :  { %v1299_v12 = vand.u32 4294901760, %v1298_v62 }
 0x197   :  { %2619 = vmatpush3.bf16.msra.mxu1 %v2618_v24  ;;  %v1292_v24 = vand.u32 4294901760, %v1291_v19  ;;  %v3555_v19 = vand.u32 4294901760, %v3337_v45 }
 0x198   :  { %2620 = vmatprep.subr.bf16.mxu1 %v2922_v32 }
 0x199   :  { %v2684_v26 = vpack.c.bf16 %v1299_v12, %v1292_v24  ;;  %v1368_v12 = vsub.f32 %v3337_v45, %v3555_v19 }
 0x19b   :  { %2622 = vmatpush3.bf16.msra.mxu1 %v2621_v59  ;;  %v1312_v59 = vsub.f32 %v3181_v25, %v1311_v23 }
 0x19c   :  { %2623 = vmatprep.subr.bf16.mxu1 %v2922_v32 }
 0x19f   :  { %2625 = vmatpush3.bf16.msra.mxu1 %v2624_v16  ;;  %v1313_v16 = vand.u32 4294901760, %v1312_v59  ;;  %v1369_v59 = vand.u32 4294901760, %v1368_v12 }
 0x1a0   :  { %2626 = vmatprep.subr.bf16.mxu1 %v2922_v32 }
 0x1a3   :  { %2628 = vmatpush3.bf16.msra.mxu1 %v2627_v14  ;;  %v2687_v14 = vpack.c.bf16 %v1313_v16, %v1306_v27  ;;  %v3554_v27 = vand.u32 4294901760, %v3340_v20 }
 0x1a4   :  { %2629 = vmatprep.subr.bf16.mxu1 %v2922_v32 }
 0x1a7   :  { %2631 = vmatpush3.bf16.msra.mxu1 %v2630_v21  ;;  %v1320_v21 = vand.u32 4294901760, %v1319_v1 }
 0x1a8   :  { %2632 = vmatprep.subr.bf16.mxu1 %v2922_v32 }
 0x1aa   :  { %2265 = vmatmul.mubr.f32.vlgmr.msra.gmra.mrb[2].mxu1 %v3138_v17 }
 0x1ab   :  { %2634 = vmatpush3.bf16.msra.mxu1 %v2998_v33  ;;  %2299 = vmatprep.mubr.msk.f32.mxu1 %vm2921_vm0, %v2920_v0  ;;  %v68_v33 = vld [vmem:[#allocation5 + $0xd8] sm:$0xff] }
 0x1ac   :  { %2635 = vmatprep.subr.bf16.mxu1 %v2922_v32 }
 0x1af   :  { %2637 = vmatpush3.bf16.msra.mxu1 %v3003_v34  ;;  %v69_v34 = vld [vmem:[#allocation5 + $0xe0] sm:$0xff] }
 0x1b0   :  { %2638 = vmatprep.subr.bf16.mxu1 %v2922_v32 }
 0x1b3   :  { %2640 = vmatpush3.bf16.msra.mxu1 %v3009_v35  ;;  %v1213_v35 = vand.u32 4294901760, %v68_v33 }
 0x1b4   :  { %2641 = vmatprep.subr.bf16.mxu1 %v2922_v32 }
 0x1b5   :  { %v3331_v54 = vsub.f32 %v68_v33, %v1213_v35  ;;  %v1327_v33 = vand.u32 4294901760, %v1326_v2  ;;  %v1375_v2 = vsub.f32 %v3340_v20, %v3554_v27 }
 0x1b7   :  { %2643 = vmatpush3.bf16.msra.mxu1 %v3014_v40  ;;  %v1216_v40 = vand.u32 4294901760, %v69_v34  ;;  %v1346_v6 = vand.u32 4294901760, %v3331_v54 }
 0x1b8   :  { %2644 = vmatprep.subr.bf16.mxu1 %v2922_v32 }
 0x1b9   :  { %v3313_v3 = vpack.c.bf16 %v1216_v40, %v1213_v35  ;;  %v3333_v30 = vsub.f32 %v69_v34, %v1216_v40  ;;  %v1332_v34 = vand.u32 4294901760, %v3189_v60  ;;  %v1339_v35 = vand.u32 4294901760, %v3191_v18 }
 0x1ba   :  { %v2690_v40 = vpack.c.bf16 %v1327_v33, %v1320_v21  ;;  %v1376_v33 = vand.u32 4294901760, %v1375_v2 }
 0x1bb   :  { %2646 = vmatpush3.bf16.msra.mxu1 %v3022_v47  ;;  %v70_v47 = vld [vmem:[#allocation5 + $0xe8] sm:$0xff]  ;;  %2673 = vmatpush3.bf16.msra.mxu0 %v3313_v3  ;;  %v1340_v4 = vsub.f32 %v3191_v18, %v1339_v35 }
 0x1bc   :  { %2647 = vmatprep.subr.bf16.mxu1 %v2922_v32  ;;  %2674 = vmatprep.subr.bf16.mxu0 %v2922_v32 }
 0x1bf   :  { %2649 = vmatpush3.bf16.msra.mxu1 %v3026_v52  ;;  %v1219_v52 = vand.u32 4294901760, %v70_v47 }
 0x1c0   :  { %2650 = vmatprep.subr.bf16.mxu1 %v2922_v32 }
 0x1c1   :  { %v3335_v31 = vsub.f32 %v70_v47, %v1219_v52  ;;  %v1333_v47 = vsub.f32 %v3189_v60, %v1332_v34 }
 0x1c3   :  { %2652 = vmatpush3.bf16.msra.mxu1 %v3030_v57  ;;  %v3317_v57 = vpack.c.bf16 %v1222_v5, %v1219_v52  ;;  %v1334_v52 = vand.u32 4294901760, %v1333_v47  ;;  %v1341_v5 = vand.u32 4294901760, %v1340_v4 }
 0x1c4   :  { %2653 = vmatprep.subr.bf16.mxu1 %v2922_v32 }
 0x1c5   :  { %2676 = vmatpush3.bf16.msra.mxu0 %v3317_v57 }
 0x1c6   :  { %2677 = vmatprep.subr.bf16.mxu0 %v2922_v32 }
 0x1c7   :  { %2655 = vmatpush3.bf16.msra.mxu1 %v3048_v7  ;;  %v73_v7 = vld [vmem:[#allocation5 + $0x100] sm:$0xff] }
 0x1c8   :  { %v1228_v9 = vand.u32 4294901760, %v73_v7 }
 0x1ca   :  { %2300 = vmatmul.mubr.f32.vlgmr.msra.gmra.mrb[2].mxu1 %v3138_v17  ;;  %v1276_v17 = vand.u32 4294901760, %v3165_v55  ;;  %v3323_v36 = vpack.c.bf16 %v1228_v9, %v1225_v8  ;;  %v3342_v29 = vsub.f32 %v73_v7, %v1228_v9  ;;  %v1353_v7 = vand.u32 4294901760, %v3333_v30 }
 0x1cb   :  { %v2693_v8 = vpack.c.bf16 %v1341_v5, %v1334_v52  ;;  %v1347_v9 = vsub.f32 %v3331_v54, %v1346_v6  ;;  %v2705_v52 = vpack.c.bf16 %v3167_v48, %v3165_v55  ;;  %v2708_v5 = vpack.c.bf16 %v3173_v38, %v3169_v53 }
 0x1cc   :  { %v1277_v37 = vsub.f32 %v3165_v55, %v1276_v17  ;;  %2679 = vmatpush3.bf16.msra.mxu0 %v3323_v36  ;;  %v3553_v16 = vand.u32 4294901760, %v3342_v29  ;;  %v2726_v12 = vpack.c.bf16 %v3342_v29, %v3340_v20  ;;  %v2759_v55 = vpack.c.bf16 %v1311_v23, %v1304_v63 }
 0x1cd   :  { %2680 = vmatprep.subr.bf16.mxu0 %v2922_v32  ;;  %v1348_v42 = vand.u32 4294901760, %v1347_v9  ;;  %v2711_v9 = vpack.c.bf16 %v3181_v25, %v3175_v28  ;;  %v2762_v38 = vpack.c.bf16 %v1325_v44, %v1318_v43  ;;  %v2765_v48 = vpack.c.bf16 %v1339_v35, %v1332_v34 }
 0x1ce   :  { %v1278_v50 = vand.u32 4294901760, %v1277_v37  ;;  %v1354_v37 = vsub.f32 %v3333_v30, %v1353_v7  ;;  %v1382_v21 = vsub.f32 %v3342_v29, %v3553_v16  ;;  %v2768_v25 = vpack.c.bf16 %v1353_v7, %v1346_v6 }
 0x1cf   :  { %v3569_v28 = vand.u32 4294901760, %v3335_v31  ;;  %v3570_v53 = vand.u32 4294901760, %v3337_v45 }
 0x1d0   :  { %v3347_v15 = vpack.c.bf16 %v1285_v41, %v1278_v50  ;;  %v1355_v50 = vand.u32 4294901760, %v1354_v37  ;;  %v3556_v41 = vand.u32 4294901760, %v3335_v31  ;;  %v1383_v47 = vand.u32 4294901760, %v1382_v21 }
 0x1d1   :  { %v2714_v37 = vpack.c.bf16 %v3187_v58, %v3185_v51  ;;  %v2771_v51 = vpack.c.bf16 %v3570_v53, %v3569_v28  ;;  %v3571_v58 = vand.u32 4294901760, %v3340_v20 }
 0x1d2   :  { %v2696_v62 = vpack.c.bf16 %v1355_v50, %v1348_v42  ;;  %v1361_v24 = vsub.f32 %v3335_v31, %v3556_v41  ;;  %v2702_v4 = vpack.c.bf16 %v1383_v47, %v1376_v33  ;;  %v2717_v42 = vpack.c.bf16 %v3191_v18, %v3189_v60 }
 0x1d3   :  { %v2720_v50 = vpack.c.bf16 %v3333_v30, %v3331_v54  ;;  %v3572_v60 = vand.u32 4294901760, %v3342_v29 }
 0x1d4   :  { %v1362_v13 = vand.u32 4294901760, %v1361_v24  ;;  %v2723_v24 = vpack.c.bf16 %v3337_v45, %v3335_v31 }
 0x1d5   :  { %v2774_v18 = vpack.c.bf16 %v3572_v60, %v3571_v58 }
 0x1d6   :  { %v2699_v1 = vpack.c.bf16 %v1369_v59, %v1362_v13  ;;  %v1844_v13 = vld [vmem:[#allocation5 + $0x109] ss:$0 sm:$0xff] }
 0x29d   :  { %v1173_v59 = vpop.f32.mrb[2].mxu1 }
 0x29e   :  { %v2802_v2 = vadd.f32 %v1844_v13, %v1173_v59  ;;  %v2301_v21 = vpop.f32.mrb[3].mxu1 }
 0x2a0   :  { %v1177_v33 = vmax.f32 %v2802_v2, 0.0 }
 0x2a2   :  { %v3419_v47 = vand.u32 4294901760, %v1177_v33 }
 0x2a4   :  { %v1264_v16 = vsub.f32 %v1177_v33, %v3419_v47 }
 0x2a6   :  { %v1265_v27 = vand.u32 4294901760, %v1264_v16 }
 0x2a8   :  { %v1266_v19 = vsub.f32 %v1264_v16, %v1265_v27 }
 0x2aa   :  { %v1267_v41 = vand.u32 4294901760, %v1266_v19 }
 0x2ac   :  { %2335 = vmatmul.mubr.f32.vlgmr.msra.gmra.mrb[2].mxu0 %v1267_v41 }
 0x2ad   :  { %2682 = vmatpush3.bf16.msra.mxu0 %v3347_v15  ;;  %2369 = vmatprep.mubr.msk.f32.mxu0 %vm2921_vm0, %v2920_v0  ;;  %v2753_v15 = vpack.c.bf16 %v1283_v22, %v1276_v17 }
 0x2ae   :  { %2683 = vmatprep.subr.bf16.mxu0 %v2922_v32 }
 0x2b1   :  { %2685 = vmatpush3.bf16.msra.mxu0 %v2684_v26  ;;  %v2756_v26 = vpack.c.bf16 %v1297_v11, %v1290_v10 }
 0x2b2   :  { %2686 = vmatprep.subr.bf16.mxu0 %v2922_v32 }
 0x2b5   :  { %2688 = vmatpush3.bf16.msra.mxu0 %v2687_v14 }
 0x2b6   :  { %2689 = vmatprep.subr.bf16.mxu0 %v2922_v32 }
 0x2b9   :  { %2691 = vmatpush3.bf16.msra.mxu0 %v2690_v40 }
 0x2ba   :  { %2692 = vmatprep.subr.bf16.mxu0 %v2922_v32 }
 0x2bd   :  { %2694 = vmatpush3.bf16.msra.mxu0 %v2693_v8 }
 0x2be   :  { %2695 = vmatprep.subr.bf16.mxu0 %v2922_v32 }
 0x2c1   :  { %2697 = vmatpush3.bf16.msra.mxu0 %v2696_v62 }
 0x2c2   :  { %2698 = vmatprep.subr.bf16.mxu0 %v2922_v32 }
 0x2c5   :  { %2700 = vmatpush3.bf16.msra.mxu0 %v2699_v1 }
 0x2c6   :  { %2701 = vmatprep.subr.bf16.mxu0 %v2922_v32 }
 0x2c9   :  { %2703 = vmatpush3.bf16.msra.mxu0 %v2702_v4 }
 0x2ca   :  { %2704 = vmatprep.subr.bf16.mxu0 %v2922_v32 }
 0x2cc   :  { %2370 = vmatmul.mubr.f32.vlgmr.msra.gmra.mrb[2].mxu0 %v3419_v47 }
 0x2cd   :  { %2706 = vmatpush3.bf16.msra.mxu0 %v2705_v52  ;;  %2404 = vmatprep.mubr.msk.f32.mxu0 %vm2921_vm0, %v2920_v0 }
 0x2ce   :  { %2707 = vmatprep.subr.bf16.mxu0 %v2922_v32 }
 0x2d1   :  { %2709 = vmatpush3.bf16.msra.mxu0 %v2708_v5 }
 0x2d2   :  { %2710 = vmatprep.subr.bf16.mxu0 %v2922_v32 }
 0x2d5   :  { %2712 = vmatpush3.bf16.msra.mxu0 %v2711_v9 }
 0x2d6   :  { %2713 = vmatprep.subr.bf16.mxu0 %v2922_v32 }
 0x2d9   :  { %2715 = vmatpush3.bf16.msra.mxu0 %v2714_v37 }
 0x2da   :  { %2716 = vmatprep.subr.bf16.mxu0 %v2922_v32 }
 0x2dd   :  { %2718 = vmatpush3.bf16.msra.mxu0 %v2717_v42 }
 0x2de   :  { %2719 = vmatprep.subr.bf16.mxu0 %v2922_v32 }
 0x2e1   :  { %2721 = vmatpush3.bf16.msra.mxu0 %v2720_v50 }
 0x2e2   :  { %2722 = vmatprep.subr.bf16.mxu0 %v2922_v32 }
 0x2e5   :  { %2724 = vmatpush3.bf16.msra.mxu0 %v2723_v24 }
 0x2e6   :  { %2725 = vmatprep.subr.bf16.mxu0 %v2922_v32 }
 0x2e9   :  { %2727 = vmatpush3.bf16.msra.mxu0 %v2726_v12 }
 0x2ea   :  { %2728 = vmatprep.subr.bf16.mxu0 %v2922_v32 }
 0x2ec   :  { %2405 = vmatmul.mubr.f32.vlgmr.msra.gmra.mrb[2].mxu0 %v1264_v16 }
 0x2ed   :  { %2730 = vmatpush3.bf16.msra.mxu0 %v3163_v46  ;;  %2439 = vmatprep.mubr.msk.f32.mxu0 %vm2921_vm0, %v2920_v0 }
 0x2ee   :  { %2731 = vmatprep.subr.bf16.mxu0 %v2922_v32 }
 0x2f1   :  { %2733 = vmatpush3.bf16.msra.mxu0 %v3171_v39 }
 0x2f2   :  { %2734 = vmatprep.subr.bf16.mxu0 %v2922_v32 }
 0x2f5   :  { %2736 = vmatpush3.bf16.msra.mxu0 %v3197_v56 }
 0x2f6   :  { %2737 = vmatprep.subr.bf16.mxu0 %v2922_v32 }
 0x2f9   :  { %2739 = vmatpush3.bf16.msra.mxu0 %v3205_v49 }
 0x2fa   :  { %2740 = vmatprep.subr.bf16.mxu0 %v2922_v32 }
 0x2fd   :  { %2742 = vmatpush3.bf16.msra.mxu0 %v3213_v61 }
 0x2fe   :  { %2743 = vmatprep.subr.bf16.mxu0 %v2922_v32 }
 0x301   :  { %2745 = vmatpush3.bf16.msra.mxu0 %v3313_v3 }
 0x302   :  { %2746 = vmatprep.subr.bf16.mxu0 %v2922_v32 }
 0x305   :  { %2748 = vmatpush3.bf16.msra.mxu0 %v3317_v57 }
 0x306   :  { %2749 = vmatprep.subr.bf16.mxu0 %v2922_v32 }
 0x309   :  { %2751 = vmatpush3.bf16.msra.mxu0 %v3323_v36 }
 0x30a   :  { %2752 = vmatprep.subr.bf16.mxu0 %v2922_v32 }
 0x30c   :  { %2440 = vmatmul.mubr.f32.vlgmr.msra.gmra.mrb[2].mxu0 %v1265_v27 }
 0x30d   :  { %2754 = vmatpush3.bf16.msra.mxu0 %v2753_v15  ;;  %2474 = vmatprep.mubr.msk.f32.mxu0 %vm2921_vm0, %v2920_v0 }
 0x30e   :  { %2755 = vmatprep.subr.bf16.mxu0 %v2922_v32 }
 0x311   :  { %2757 = vmatpush3.bf16.msra.mxu0 %v2756_v26 }
 0x312   :  { %2758 = vmatprep.subr.bf16.mxu0 %v2922_v32 }
 0x315   :  { %2760 = vmatpush3.bf16.msra.mxu0 %v2759_v55 }
 0x316   :  { %2761 = vmatprep.subr.bf16.mxu0 %v2922_v32 }
 0x319   :  { %2763 = vmatpush3.bf16.msra.mxu0 %v2762_v38 }
 0x31a   :  { %2764 = vmatprep.subr.bf16.mxu0 %v2922_v32 }
 0x31d   :  { %2766 = vmatpush3.bf16.msra.mxu0 %v2765_v48 }
 0x31e   :  { %2767 = vmatprep.subr.bf16.mxu0 %v2922_v32 }
 0x321   :  { %2769 = vmatpush3.bf16.msra.mxu0 %v2768_v25 }
 0x322   :  { %2770 = vmatprep.subr.bf16.mxu0 %v2922_v32 }
 0x325   :  { %2772 = vmatpush3.bf16.msra.mxu0 %v2771_v51 }
 0x326   :  { %2773 = vmatprep.subr.bf16.mxu0 %v2922_v32 }
 0x329   :  { %2775 = vmatpush3.bf16.msra.mxu0 %v2774_v18 }
 0x32a   :  { %2776 = vmatprep.subr.bf16.mxu0 %v2922_v32 }
 0x32c   :  { %2475 = vmatmul.mubr.f32.vlgmr.msra.gmra.mrb[2].mxu0 %v3419_v47 }
 0x32d   :  { %2778 = vmatpush3.bf16.msra.mxu0 %v3163_v46  ;;  %2509 = vmatprep.mubr.msk.f32.mxu0 %vm2921_vm0, %v2920_v0  ;;  %v1845_v0 = vld [vmem:[#allocation5 + $0x10a] ss:$0 sm:$0xff] }
 0x32e   :  { %2779 = vmatprep.subr.bf16.mxu0 %v2922_v32 }
 0x331   :  { %2781 = vmatpush3.bf16.msra.mxu0 %v3171_v39 }
 0x332   :  { %2782 = vmatprep.subr.bf16.mxu0 %v2922_v32 }
 0x335   :  { %2784 = vmatpush3.bf16.msra.mxu0 %v3197_v56 }
 0x336   :  { %2785 = vmatprep.subr.bf16.mxu0 %v2922_v32 }
 0x339   :  { %2787 = vmatpush3.bf16.msra.mxu0 %v3205_v49 }
 0x33a   :  { %2788 = vmatprep.subr.bf16.mxu0 %v2922_v32 }
 0x33d   :  { %2790 = vmatpush3.bf16.msra.mxu0 %v3213_v61 }
 0x33e   :  { %2791 = vmatprep.subr.bf16.mxu0 %v2922_v32 }
 0x341   :  { %2793 = vmatpush3.bf16.msra.mxu0 %v3313_v3 }
 0x342   :  { %2794 = vmatprep.subr.bf16.mxu0 %v2922_v32 }
 0x345   :  { %2796 = vmatpush3.bf16.msra.mxu0 %v3317_v57 }
 0x346   :  { %2797 = vmatprep.subr.bf16.mxu0 %v2922_v32 }
 0x349   :  { %2799 = vmatpush3.bf16.msra.mxu0 %v3323_v36 }
 0x34c   :  { %2510 = vmatmul.mubr.f32.vlgmr.msra.gmra.mrb[2].mxu0 %v3419_v47 }
 0x41f   :  { %v1819_v39 = vpop.f32.mrb[2].mxu0 }
 0x420   :  { %v2803_v46 = vadd.f32 %v1845_v0, %v1819_v39  ;;  %v2511_v56 = vpop.f32.mrb[3].mxu0 }
 0x422   :  { %1824 = vst.msk [vmem:[#allocation7] sm:$0xff] %vm1823_vm2, %v2803_v46 }
 0x423   :  { %1829 = vsyncadd [#allocation4], 96  ;;  %s2923_s1 = smov [#allocation7]  }
 0x424   :  { %s1830_s9 = sshll.u32 %s2923_s1, 4  ;;  %s1831_s9 = int_to_ptr.vmem [resolvable:$true] %s1830_s9 }
 0x425   :  { %s2886_s10 = scalar_lea.vmem %s1831_s9, 32  ;;  %s2890_s11 = scalar_lea.vmem %s1831_s9, 128 }
 0x426   :  { %p2887_p2 = scmp.ne.s32.totalorder %s1831_s9, %s2886_s10  ;;  %p2891_p3 = scmp.lt.s32.totalorder %s1831_s9, %s1831_s9 }
 0x427   :  { %p2892_p4 = scmp.lt.s32.totalorder %s2890_s11, %s2886_s10 }
 0x429   :  { %p2893_p5 = por %p2892_p4, %p2891_p3 }
 0x42b   :  { %p2894_p6 = pnand %p2893_p5, %p2887_p2 }
 0x42d   :  { %2897 = shalt.err (!%p2894_p6)
}
 0x42e   :  { %s2898_s14 = scalar_lea.hbm %s3540_s2, 32 }
 0x42f   :  { %p2899_p7 = scmp.ne.s32.totalorder %s3540_s2, %s2898_s14  ;;  %p2902_p8 = scmp.lt.u32.totalorder %s2898_s14, %s3540_s2 }
 0x431   :  { %p2904_p9 = pnand %p2902_p8, %p2899_p7 }
 0x433   :  { %2907 = shalt.err (!%p2904_p9)
}
 0x434   :  { %1836 = dma.vmem_to_hbm [thread:$0]  %s1831_s9, 32, %s3540_s2, [#allocation4], %s2915_s20, %s2915_s20, %s2916_s21  }
 0x435   :  { %2912 = dma.done.wait [#allocation4], 128  }
 0x436   :  { %2913 = vsyncadd [#allocation4], 4294967168 }
 0x437   :  { %1840 = vsyncpa [#allocation3], 1 }
 0x438   :  { %1841 = vsyncpa [#allocation6], 1 }
 0x439   :  { %1842 = vsyncpa [#allocation4], 1 }

</bundles_post_ra>
